<compile_context>
chip_gen: v5e
topology: v5e:2x2
jax: 0.10.0
libtpu: 0.0.40
codegen_flags: <defaults>
</compile_context>

<pallas_src>
import jax
import jax.numpy as jnp
from jax.experimental import pallas as pl
from jax.experimental.pallas import tpu as pltpu

_LANES = 128
_SUBLANES = 8
# ~2 MiB per tile buffer: comfortably inside scoped VMEM even with
# double-buffered in+out streams on v7x (64 MiB physical / 32 MiB scoped).
_TARGET_TILE_BYTES = 2 * 1024 * 1024


def _identity_copy_kernel(x_ref, o_ref):
    # forward(input, hidden) = (input, input): one identity copy is the hot path.
    o_ref[...] = x_ref[...]


def _choose_row_tile(rows, row_bytes):
    """Largest multiple-of-8 row tile that divides `rows` and fits the budget."""
    if rows % _SUBLANES != 0:
        # Fall back to a single full-array block (always a legal block shape).
        return rows
    tb = rows
    max_rows = max(_SUBLANES, _TARGET_TILE_BYTES // max(row_bytes, 1))
    # Halve while staying a divisor of `rows` and a multiple of 8.
    while tb > max_rows and tb % 2 == 0 and (tb // 2) % _SUBLANES == 0:
        tb //= 2
    return tb


def _pallas_identity_2d(x2d):
    rows, cols = x2d.shape
    row_bytes = cols * x2d.dtype.itemsize
    tb = _choose_row_tile(rows, row_bytes)
    grid = (rows // tb,)
    return pl.pallas_call(
        _identity_copy_kernel,
        out_shape=jax.ShapeDtypeStruct((rows, cols), x2d.dtype),
        grid=grid,
        in_specs=[pl.BlockSpec((tb, cols), lambda i: (i, 0))],
        out_specs=pl.BlockSpec((tb, cols), lambda i: (i, 0)),
        compiler_params=pltpu.CompilerParams(
            dimension_semantics=("parallel",),
        ),
    )(x2d)


def cellbase_forward(x, hidden=None):
    """Pallas implementation of CellBase.forward.

    Args:
      x:      (batch, input_size) array.
      hidden: (batch, hidden_size) array; interface-only, never DMA'd or read.

    Returns:
      (output, new_hidden), both equal to `x` (same array returned twice,
      matching PyTorch's aliased return).
    """
    del hidden  # unused by the forward pass; intentionally not passed to pallas_call
    batch, input_size = x.shape
    n = batch * input_size
    if n % _LANES == 0:
        # Lane-dense view: last dim is exactly 128, so stores are unmasked.
        x_view = x.reshape(n // _LANES, _LANES)
        y = _pallas_identity_2d(x_view).reshape(batch, input_size)
    else:
        # Small / ragged shapes: single full-array block (block == array shape).
        y = _pallas_identity_2d(x)
    return y, y


class CellBase:
    """JAX/Pallas mirror of the PyTorch CellBase 'id' cell (no parameters)."""

    name = "id"

    def __init__(self, input_size, hidden_size):
        self.input_size = input_size
        self.hidden_size = hidden_size
        # reset_parameters() is a no-op: CellBase has no weights.

    def forward(self, x, hidden):
        return cellbase_forward(x, hidden)

    def default_state(self, x, batch_size=None):
        b = x.shape[0] if batch_size is None else batch_size
        return jnp.zeros((b, self.hidden_size), dtype=x.dtype)

    def output(self, h):
        return h

    def state_size(self):
        return self.hidden_size

    def output_size(self):
        return self.hidden_size


if __name__ == "__main__":
    key = jax.random.PRNGKey(0)

    # Small shapes consistent with the module interface.
    batch, input_size, hidden_size = 2, 16, 32
    cell = CellBase(input_size, hidden_size)

    kx, k2 = jax.random.split(key)
    x = jax.random.normal(kx, (batch, input_size), dtype=jnp.float32)
    h0 = cell.default_state(x)

    out, new_h = cell.forward(x, h0)
    jax.block_until_ready(out)
    jax.block_until_ready(new_h)
    assert out.shape == x.shape and new_h.shape == x.shape
    assert jnp.array_equal(out, x)
    assert jnp.array_equal(new_h, x)

    # Second small check exercising the lane-dense (rows, 128) path.
    x2 = jax.random.normal(k2, (64, 32), dtype=jnp.float32)  # 64*32 = 2048 = 16*128
    out2, new_h2 = cellbase_forward(x2, jnp.zeros((64, hidden_size), jnp.float32))
    jax.block_until_ready(out2)
    assert jnp.array_equal(out2, x2)
    assert jnp.array_equal(new_h2, x2)

    print("KERNEL_OK")
</pallas_src>

<mosaic_0001>
module attributes {stable_mosaic.version = 11 : i64} {
  func.func @_identity_copy_kernel(%arg0: i32, %arg1: memref<2x16xf32, #tpu.memory_space<vmem>>, %arg2: memref<2x16xf32, #tpu.memory_space<vmem>>) attributes {dimension_semantics = [#tpu.dimension_semantics<parallel>], iteration_bounds = array<i64: 1>, scalar_prefetch = 0 : i64, scratch_operands = 0 : i64, tpu.core_type = #tpu.core_type<tc>, window_params = [{transform_indices = @transform_0, window_bounds = array<i64: 2, 16>}, {transform_indices = @transform_1, window_bounds = array<i64: 2, 16>}]} {
    %c0 = arith.constant 0 : index
    %c0_0 = arith.constant 0 : index
    %0 = vector.load %arg1[%c0, %c0_0] : memref<2x16xf32, #tpu.memory_space<vmem>>, vector<2x16xf32>
    %c0_1 = arith.constant 0 : index
    %c0_2 = arith.constant 0 : index
    %1 = vector.load %arg2[%c0_1, %c0_2] : memref<2x16xf32, #tpu.memory_space<vmem>>, vector<2x16xf32>
    tpu.vector_store %arg2[%c0_1, %c0_2], %0 {strides = array<i32>} : memref<2x16xf32, #tpu.memory_space<vmem>>, vector<2x16xf32>,
    return
  }
  func.func @transform_0(%arg0: i32) -> (i32, i32) {
    %c0_i32 = arith.constant 0 : i32
    %c0_i32_0 = arith.constant 0 : i32
    return %arg0, %c0_i32 : i32, i32
  }
  func.func @transform_1(%arg0: i32) -> (i32, i32) {
    %c0_i32 = arith.constant 0 : i32
    %c0_i32_0 = arith.constant 0 : i32
    return %arg0, %c0_i32 : i32, i32
  }
}

</mosaic_0001>

<bundles_post_ra>
// kernel: tpu_custom_call.1
= control target key start
LH: loop header
LB: loop body
LE: loop exit
PB: predicated region body
PF: predicated region fallthrough
CT: control target
= control target key end

     0   :  { %6 = vsyncpa [#allocation3], 0  ;;  %s115_s0 = inlined_call_operand.hbm [shape: f32[2,16], index: 0, kind: input, shape index: {}]   ;;  %s116_s1 = inlined_call_operand.hbm [shape: f32[2,16], index: 1, kind: output, shape index: {}]  }
   0x1   :  { %7 = vsyncpa [#allocation4], 0  ;;  %s13_s8 = sshll.u32 %s115_s0, 4  ;;  %s97_s9 = smov [#allocation2]   ;;  %s14_s8 = int_to_ptr.hbm [resolvable:$true] %s13_s8 }
   0x2   :  { %s15_s10 = sshll.u32 %s97_s9, 4  ;;  %s16_s10 = int_to_ptr.vmem [resolvable:$true] %s15_s10 }
   0x3   :  { %18 = dma.hbm_to_vmem [thread:$0]  %s14_s8, 32, %s16_s10, [#allocation3]  }
   0x4   :  { %93 = dma.done.wait [#allocation3], 32  }
   0x5   :  { %94 = vsyncadd [#allocation3], 4294967264  ;;  %s98_s11 = smov [#allocation5]   ;;  %s33_s15 = sshll.u32 %s116_s1, 4  ;;  %vm24_vm0 = vcmask 123904   ;;  %s34_s15 = int_to_ptr.hbm [resolvable:$true] %s33_s15 }
   0x6   :  { %s31_s12 = sshll.u32 %s98_s11, 4  ;;  %v23_v0 = vld [vmem:[#allocation2] sm:$0x3]  ;;  %s32_s12 = int_to_ptr.vmem [resolvable:$true] %s31_s12 }
   0x7   :  { %25 = vst.msk [vmem:[#allocation5] sm:$0x3] %vm24_vm0, %v23_v0 }
   0x8   :  { %36 = dma.vmem_to_hbm [thread:$0]  %s32_s12, 32, %s34_s15, [#allocation4]  }
   0x9   :  { %95 = dma.done.wait [#allocation4], 32  }
   0xa   :  { %96 = vsyncadd [#allocation4], 4294967264 }
   0xb   :  { %41 = vsyncpa [#allocation3], 1 }
   0xc   :  { %42 = vsyncpa [#allocation4], 1 }

</bundles_post_ra>
